<compile_context>
chip_gen: v6e
topology: v6e:2x2x1
jax: 0.10.0
libtpu: 0.0.40
codegen_flags: <defaults>
</compile_context>

<pallas_src>
import jax
import jax.numpy as jnp
from jax.experimental import pallas as pl
from jax.experimental.pallas import tpu as pltpu


def _round_up(x, m):
    return ((x + m - 1) // m) * m


def encoder_kernel(self_ref, neigh_ref, w_self_ref, w_neigh_ref, out_ref):
    # self_ref   : (TB, F)     f32
    # neigh_ref  : (TB, S, F)  f32
    # w_self_ref : (F, E)      bf16
    # w_neigh_ref: (F, E)      bf16   (1/S mean scale pre-folded in)
    # out_ref    : (TB, E)     f32
    #
    # Neighbor reduction in f32 (exact, v5e VPU has no bf16 path); feed bf16
    # only to the MXU; accumulate in f32.
    neigh_sum = jnp.sum(neigh_ref[...], axis=1)                       # (TB, F) f32
    acc = jnp.dot(self_ref[...].astype(jnp.bfloat16), w_self_ref[...],
                  preferred_element_type=jnp.float32)
    acc = acc + jnp.dot(neigh_sum.astype(jnp.bfloat16), w_neigh_ref[...],
                        preferred_element_type=jnp.float32)
    out_ref[...] = jnp.maximum(acc, 0.0).astype(out_ref.dtype)


def encoder_forward(self_feats, neigh_feats, weight,
                    *, vmem_budget_bytes=20 << 20):
    """self_feats: (B,F) f32, neigh_feats: (B,S,F) f32, weight: (2F,E) f32."""
    B, F = self_feats.shape
    _, S, _ = neigh_feats.shape
    E = weight.shape[1]

    # Split the weight, fold the 1/S mean scale into the neighbor half
    # (one-time transform of tiny static params), cast to bf16 for the MXU.
    w_self = weight[:F, :].astype(jnp.bfloat16)
    w_neigh = (weight[F:, :] * (1.0 / S)).astype(jnp.bfloat16)

    # Pick TB: largest multiple of 8 whose double-buffered f32 tiles (plus
    # in-kernel temporaries) fit the VMEM budget, capped at 512.
    per_row = (2 * S * F * 4        # neigh f32, double buffered
               + 2 * F * 4          # self f32, double buffered
               + 2 * E * 4          # out f32, double buffered
               + S * F * 4          # neighbor-sum temp headroom
               + 2 * F * 2          # bf16 casts of self / neigh_sum
               + 2 * E * 4)         # f32 accumulator headroom
    fixed = 2 * (2 * F * E * 2)     # both bf16 weight halves (x2 buffers)
    tb = (vmem_budget_bytes - fixed) // max(per_row, 1)
    tb = max(8, min(512, (tb // 8) * 8, _round_up(B, 8)))

    flops = 2 * B * (2 * F) * E + B * S * F
    bytes_accessed = 4 * (B * F + B * S * F + B * E) + 2 * (2 * F * E)

    out = pl.pallas_call(
        encoder_kernel,
        out_shape=jax.ShapeDtypeStruct((B, E), jnp.float32),
        grid_spec=pltpu.PrefetchScalarGridSpec(
            num_scalar_prefetch=0,
            grid=(pl.cdiv(B, tb),),
            in_specs=[
                pl.BlockSpec((tb, F), lambda i: (i, 0)),
                pl.BlockSpec((tb, S, F), lambda i: (i, 0, 0)),
                pl.BlockSpec((F, E), lambda i: (0, 0)),
                pl.BlockSpec((F, E), lambda i: (0, 0)),
            ],
            out_specs=pl.BlockSpec((tb, E), lambda i: (i, 0)),
        ),
        compiler_params=pltpu.CompilerParams(
            dimension_semantics=("parallel",),
            vmem_limit_bytes=48 * 1024 * 1024,
        ),
        cost_estimate=pl.CostEstimate(
            flops=flops, transcendentals=0, bytes_accessed=bytes_accessed),
    )(self_feats, neigh_feats, w_self, w_neigh)
    return out


def xavier_uniform(key, shape, dtype=jnp.float32):
    fan_in, fan_out = shape
    bound = (6.0 / (fan_in + fan_out)) ** 0.5
    return jax.random.uniform(key, shape, dtype, minval=-bound, maxval=bound)


def _reference(self_feats, neigh_feats, weight):
    combined = jnp.concatenate(
        [self_feats, jnp.mean(neigh_feats, axis=1)], axis=1)
    return jnp.maximum(combined @ weight, 0.0)


if __name__ == "__main__":
    # Small, deterministic synthetic setup consistent with the module's shapes.
    num_nodes = 16     # size of embedding table / graph
    feat_dim = 32      # feature_dim
    embed_dim = 32     # embed_dim
    num_sample = 4     # sampled neighbors per node

    key = jax.random.PRNGKey(0)
    k_feat, k_w, k_nodes, k_adj, k_nodes2, k_adj2 = jax.random.split(key, 6)

    # features: embedding table (num_nodes, feat_dim)
    features = jax.random.normal(k_feat, (num_nodes, feat_dim), jnp.float32)
    # weight: (2 * feat_dim, embed_dim), xavier-uniform init (deterministic)
    weight = xavier_uniform(k_w, (2 * feat_dim, embed_dim))

    def run_case(batch, k_n, k_a):
        # nodes: the batch of node ids being encoded
        nodes = jax.random.randint(k_n, (batch,), 0, num_nodes)
        # adj_lists + num_sample sampling simulated as a fixed
        # (batch, num_sample) neighbor-id matrix (deterministic stand-in for
        # the aggregator's sampler).
        neigh_ids = jax.random.randint(k_a, (batch, num_sample), 0, num_nodes)

        # Glue: embedding lookups (gather) done in plain JAX.
        # TODO(synk): the adjacency-list sampling + embedding gather could be
        # fused into the kernel via scalar-prefetched ids once F is large
        # enough for efficient per-row DMAs; at these sizes the XLA gather is
        # kept outside the kernel.
        self_feats = jnp.take(features, nodes, axis=0)        # (B, F)
        neigh_feats = jnp.take(features, neigh_ids, axis=0)   # (B, S, F)

        out = encoder_forward(self_feats, neigh_feats, weight)
        out = jax.block_until_ready(out)

        ref = _reference(self_feats, neigh_feats, weight)
        assert out.shape == (batch, embed_dim)
        assert jnp.allclose(out, ref, atol=5e-2, rtol=5e-2), (
            float(jnp.max(jnp.abs(out - ref))))

    run_case(8, k_nodes, k_adj)     # divisible batch (single full tile)
    run_case(13, k_nodes2, k_adj2)  # non-divisible batch (masked edge tile)

    print("KERNEL_OK")
</pallas_src>

<mosaic_0001>
module attributes {stable_mosaic.version = 11 : i64} {
  func.func @encoder_kernel(%arg0: i32, %arg1: memref<8x32xf32, #tpu.memory_space<vmem>>, %arg2: memref<8x4x32xf32, #tpu.memory_space<vmem>>, %arg3: memref<32x32xbf16, #tpu.memory_space<vmem>>, %arg4: memref<32x32xbf16, #tpu.memory_space<vmem>>, %arg5: memref<8x32xf32, #tpu.memory_space<vmem>>) attributes {dimension_semantics = [#tpu.dimension_semantics<parallel>], iteration_bounds = array<i64: 1>, scalar_prefetch = 0 : i64, scratch_operands = 0 : i64, tpu.core_type = #tpu.core_type<tc>, window_params = [{transform_indices = @transform_0, window_bounds = array<i64: 8, 32>}, {transform_indices = @transform_1, window_bounds = array<i64: 8, 4, 32>}, {pipeline_mode = #tpu.pipeline_mode<synchronous>, transform_indices = @transform_2, window_bounds = array<i64: 32, 32>}, {pipeline_mode = #tpu.pipeline_mode<synchronous>, transform_indices = @transform_3, window_bounds = array<i64: 32, 32>}, {transform_indices = @transform_4, window_bounds = array<i64: 8, 32>}]} {
    %c0 = arith.constant 0 : index
    %c0_0 = arith.constant 0 : index
    %c0_1 = arith.constant 0 : index
    %0 = vector.load %arg2[%c0, %c0_0, %c0_1] : memref<8x4x32xf32, #tpu.memory_space<vmem>>, vector<8x4x32xf32>
    %cst = arith.constant dense<0.000000e+00> : vector<8x32xf32>
    %1 = vector.multi_reduction <add>, %0, %cst [1] : vector<8x4x32xf32> to vector<8x32xf32>
    %c0_2 = arith.constant 0 : index
    %c0_3 = arith.constant 0 : index
    %2 = vector.load %arg1[%c0_2, %c0_3] : memref<8x32xf32, #tpu.memory_space<vmem>>, vector<8x32xf32>
    %3 = arith.truncf %2 : vector<8x32xf32> to vector<8x32xbf16>
    %c0_4 = arith.constant 0 : index
    %c0_5 = arith.constant 0 : index
    %4 = vector.load %arg3[%c0_4, %c0_5] : memref<32x32xbf16, #tpu.memory_space<vmem>>, vector<32x32xbf16>
    %cst_6 = arith.constant dense<0.000000e+00> : vector<8x32xf32>
    %5 = tpu.matmul %3, %4, %cst_6 {dimension_numbers = #tpu.dot_dimension_numbers<[1], [0], [0], [1], [0, 0, 1, 1], [], []>} : vector<8x32xbf16>, vector<32x32xbf16>, vector<8x32xf32> -> vector<8x32xf32>
    %6 = arith.truncf %1 : vector<8x32xf32> to vector<8x32xbf16>
    %c0_7 = arith.constant 0 : index
    %c0_8 = arith.constant 0 : index
    %7 = vector.load %arg4[%c0_7, %c0_8] : memref<32x32xbf16, #tpu.memory_space<vmem>>, vector<32x32xbf16>
    %cst_9 = arith.constant dense<0.000000e+00> : vector<8x32xf32>
    %8 = tpu.matmul %6, %7, %cst_9 {dimension_numbers = #tpu.dot_dimension_numbers<[1], [0], [0], [1], [0, 0, 1, 1], [], []>} : vector<8x32xbf16>, vector<32x32xbf16>, vector<8x32xf32> -> vector<8x32xf32>
    %9 = arith.addf %5, %8 : vector<8x32xf32>
    %cst_10 = arith.constant 0.000000e+00 : f32
    %10 = vector.broadcast %cst_10 : f32 to vector<8x32xf32>
    %11 = arith.maximumf %9, %10 : vector<8x32xf32>
    %c0_11 = arith.constant 0 : index
    %c0_12 = arith.constant 0 : index
    %12 = vector.load %arg5[%c0_11, %c0_12] : memref<8x32xf32, #tpu.memory_space<vmem>>, vector<8x32xf32>
    tpu.vector_store %arg5[%c0_11, %c0_12], %11 {strides = array<i32>} : memref<8x32xf32, #tpu.memory_space<vmem>>, vector<8x32xf32>,
    return
  }
  func.func @transform_0(%arg0: i32) -> (i32, i32) {
    %c0_i32 = arith.constant 0 : i32
    %c0_i32_0 = arith.constant 0 : i32
    return %arg0, %c0_i32 : i32, i32
  }
  func.func @transform_1(%arg0: i32) -> (i32, i32, i32) {
    %c0_i32 = arith.constant 0 : i32
    %c0_i32_0 = arith.constant 0 : i32
    %c0_i32_1 = arith.constant 0 : i32
    return %arg0, %c0_i32, %c0_i32_0 : i32, i32, i32
  }
  func.func @transform_2(%arg0: i32) -> (i32, i32) {
    %c0_i32 = arith.constant 0 : i32
    %c0_i32_0 = arith.constant 0 : i32
    %c0_i32_1 = arith.constant 0 : i32
    return %c0_i32, %c0_i32_0 : i32, i32
  }
  func.func @transform_3(%arg0: i32) -> (i32, i32) {
    %c0_i32 = arith.constant 0 : i32
    %c0_i32_0 = arith.constant 0 : i32
    %c0_i32_1 = arith.constant 0 : i32
    return %c0_i32, %c0_i32_0 : i32, i32
  }
  func.func @transform_4(%arg0: i32) -> (i32, i32) {
    %c0_i32 = arith.constant 0 : i32
    %c0_i32_0 = arith.constant 0 : i32
    return %arg0, %c0_i32 : i32, i32
  }
}

</mosaic_0001>

<bundles_post_ra>
// kernel: tpu_custom_call.1
= control target key start
LH: loop header
LB: loop body
LE: loop exit
PB: predicated region body
PF: predicated region fallthrough
CT: control target
= control target key end

     0   :  { %9 = vsyncpa [#allocation3], 0  ;;  %s536_s0 = inlined_call_operand.hbm [shape: f32[8,32], index: 0, kind: input, shape index: {}]   ;;  %s537_s1 = inlined_call_operand.hbm [shape: f32[8,4,32], index: 1, kind: input, shape index: {}]   ;;  %s538_s2 = inlined_call_operand.hbm [shape: bf16[32,32], index: 2, kind: input, shape index: {}]   ;;  %s539_s3 = inlined_call_operand.hbm [shape: bf16[32,32], index: 3, kind: input, shape index: {}]   ;;  %s540_s4 = inlined_call_operand.hbm [shape: f32[8,32], index: 4, kind: output, shape index: {}]  }
   0x1   :  { %10 = vsyncpa [#allocation6], 0 }
   0x2   :  { %11 = vsyncpa [#allocation9], 0 }
   0x3   :  { %12 = vsyncpa [#allocation4], 0  ;;  %s465_s15 = smov [#allocation5]  }
   0x4   :  { %s28_s16 = sshll.u32 %s465_s15, 4  ;;  %s29_s16 = int_to_ptr.vmem [resolvable:$true] %s28_s16 }
   0x5   :  { %s365_s17 = scalar_lea.vmem %s29_s16, 512  ;;  %p370_p1 = scmp.lt.s32.totalorder %s29_s16, %s29_s16 }
   0x6   :  { %p366_p0 = scmp.ne.s32.totalorder %s29_s16, %s365_s17  ;;  %p371_p2 = scmp.lt.s32.totalorder %s365_s17, %s365_s17 }
   0x8   :  { %p372_p3 = por %p371_p2, %p370_p1 }
   0xa   :  { %p373_p4 = pnand %p372_p3, %p366_p0 }
   0xc   :  { %376 = shalt.err (!%p373_p4)
}
   0xd   :  { %s466_s18 = smov 64   ;;  %s467_s19 = smov 4  }
   0xe   :  { %34 = dma.hbm_to_vmem [thread:$0]  %s537_s1, 512, %s29_s16, [#allocation6], %s466_s18, %s466_s18, %s467_s19  }
   0xf   :  { %s468_s22 = smov [#allocation2]   ;;  %s469_s24 = smov [#allocation7]  }
  0x10   :  { %s19_s23 = sshll.u32 %s468_s22, 4  ;;  %s40_s25 = sshll.u32 %s469_s24, 4  ;;  %s20_s23 = int_to_ptr.vmem [resolvable:$true] %s19_s23  ;;  %s41_s25 = int_to_ptr.vmem [resolvable:$true] %s40_s25 }
  0x11   :  { %s385_s26 = scalar_lea.vmem %s20_s23, 128  ;;  %p390_p6 = scmp.lt.s32.totalorder %s20_s23, %s20_s23 }
  0x12   :  { %p386_p5 = scmp.ne.s32.totalorder %s20_s23, %s385_s26  ;;  %p391_p7 = scmp.lt.s32.totalorder %s385_s26, %s385_s26 }
  0x14   :  { %p392_p8 = por %p391_p7, %p390_p6 }
  0x16   :  { %p393_p9 = pnand %p392_p8, %p386_p5 }
  0x18   :  { %396 = shalt.err (!%p393_p9)
}
  0x19   :  { %22 = dma.hbm_to_vmem [thread:$0]  %s536_s0, 128, %s20_s23, [#allocation3]  }
  0x1a   :  { %s405_s29 = scalar_lea.vmem %s41_s25, 256  ;;  %p410_p11 = scmp.lt.s32.totalorder %s41_s25, %s41_s25 }
  0x1b   :  { %p406_p10 = scmp.ne.s32.totalorder %s41_s25, %s405_s29  ;;  %p411_p12 = scmp.lt.s32.totalorder %s405_s29, %s405_s29 }
  0x1d   :  { %p412_p13 = por %p411_p12, %p410_p11 }
  0x1f   :  { %p413_p0 = pnand %p412_p13, %p406_p10 }
  0x21   :  { %416 = shalt.err (!%p413_p0)
}
  0x22   :  { %46 = dma.hbm_to_vmem [thread:$0]  %s538_s2, 256, %s41_s25, [#allocation6], %s466_s18, %s466_s18, %s467_s19  }
  0x23   :  { %s470_s5 = smov [#allocation8]  }
  0x24   :  { %s52_s6 = sshll.u32 %s470_s5, 4  ;;  %s53_s6 = int_to_ptr.vmem [resolvable:$true] %s52_s6 }
  0x25   :  { %s425_s7 = scalar_lea.vmem %s53_s6, 256  ;;  %p430_p2 = scmp.lt.s32.totalorder %s53_s6, %s53_s6 }
  0x26   :  { %p426_p1 = scmp.ne.s32.totalorder %s53_s6, %s425_s7  ;;  %p431_p3 = scmp.lt.s32.totalorder %s425_s7, %s425_s7 }
  0x28   :  { %p432_p4 = por %p431_p3, %p430_p2 }
  0x2a   :  { %p433_p5 = pnand %p432_p4, %p426_p1 }
  0x2c   :  { %436 = shalt.err (!%p433_p5)
}
  0x2d   :  { %58 = dma.hbm_to_vmem [thread:$0]  %s539_s3, 256, %s53_s6, [#allocation9], %s466_s18, %s466_s18, %s467_s19  }
  0x2e   :  { %457 = dma.done.wait [#allocation3], 128  }
  0x2f   :  { %458 = vsyncadd [#allocation3], 4294967168 }
  0x30   :  { %459 = dma.done.wait [#allocation6], 768  }
  0x31   :  { %460 = vsyncadd [#allocation6], 4294966528 }
  0x32   :  { %461 = dma.done.wait [#allocation9], 256  }
  0x33   :  { %462 = vsyncadd [#allocation9], 4294967040  ;;  %v471_v0 = vmov 0.0   ;;  %vm472_vm0 = vmmov 0   ;;  %v353_v1 = vld [vmem:[#allocation7 + $0x8] sm:$0xff]   ;;  %v354_v2 = vld [vmem:[#allocation7] sm:$0xff]  }
  0x34   :  { %336 = vmatprep.subr.bf16.mxu1 %v471_v0  ;;  %328 = vmatprep.subr.bf16.mxu0 %v471_v0  ;;  %v355_v3 = vld [vmem:[#allocation8 + $0x8] sm:$0xff]   ;;  %vm198_vm1 = vcmask 261120   ;;  %v356_v5 = vld [vmem:[#allocation8] sm:$0xff]   ;;  %v72_v6 = vld [vmem:[#allocation5] sm:$0xf]  ;;  %vm80_vm2 = vcmask 257024  }
  0x35   :  { %340 = vmatprep.mubr.msk.bf16.mxu1 %vm472_vm0, %v471_v0  ;;  %332 = vmatprep.mubr.msk.bf16.mxu0 %vm472_vm0, %v471_v0  ;;  %v137_v4 = vld [vmem:[#allocation2] sm:$0xff]  ;;  %v73_v7 = vld [vmem:[#allocation5 + $0x4] sm:$0xf]  ;;  %v74_v9 = vld [vmem:[#allocation5 + $0x8] sm:$0xf]  ;;  %v81_v15 = vsel %vm80_vm2, %v72_v6, 0.0 }
  0x36   :  { %337 = vmatpush3.bf16.msra.mxu1 %v353_v1  ;;  %329 = vmatpush3.bf16.msra.mxu0 %v355_v3  ;;  %v138_v8 = vpack.c.bf16 %v137_v4, %v137_v4  ;;  %v75_v10 = vld [vmem:[#allocation5 + $0xc] sm:$0xf]  ;;  %v76_v11 = vld [vmem:[#allocation5 + $0x10] sm:$0xf]  ;;  %v77_v12 = vld [vmem:[#allocation5 + $0x14] sm:$0xf] }
  0x37   :  { %338 = vmatprep.subr.bf16.mxu1 %v471_v0  ;;  %330 = vmatprep.subr.bf16.mxu0 %v471_v0  ;;  %v78_v13 = vld [vmem:[#allocation5 + $0x18] sm:$0xf]  ;;  %v79_v14 = vld [vmem:[#allocation5 + $0x1c] sm:$0xf]  ;;  %v88_v16 = vsel %vm80_vm2, %v73_v7, 0.0  ;;  %v95_v17 = vsel %vm80_vm2, %v74_v9, 0.0 }
  0x38   :  { %v102_v18 = vsel %vm80_vm2, %v75_v10, 0.0  ;;  %v82_v19 = vrot.slane %v81_v15, 4  ;;  %v89_v20 = vrot.slane %v88_v16, 4  ;;  %v96_v21 = vrot.slane %v95_v17, 4  ;;  %s473_s2 = smov [#allocation10]  }
  0x39   :  { %v103_v22 = vrot.slane %v102_v18, 4  ;;  %v109_v23 = vsel %vm80_vm2, %v76_v11, 0.0  ;;  %v116_v24 = vsel %vm80_vm2, %v77_v12, 0.0  ;;  %v123_v25 = vsel %vm80_vm2, %v78_v13, 0.0  ;;  %s305_s3 = sshll.u32 %s473_s2, 4  ;;  %s306_s3 = int_to_ptr.vmem [resolvable:$true] %s305_s3 }
  0x3a   :  { %339 = vmatpush3.bf16.msra.mxu1 %v354_v2  ;;  %331 = vmatpush3.bf16.msra.mxu0 %v356_v5  ;;  %v130_v26 = vsel %vm80_vm2, %v79_v14, 0.0  ;;  %v83_v27 = vadd.f32 %v82_v19, %v81_v15  ;;  %v90_v28 = vadd.f32 %v89_v20, %v88_v16  ;;  %v97_v29 = vadd.f32 %v96_v21, %v95_v17  ;;  %s437_s9 = scalar_lea.vmem %s306_s3, 128  ;;  %p442_p7 = scmp.lt.s32.totalorder %s306_s3, %s306_s3 }
  0x3b   :  { %v104_v30 = vadd.f32 %v103_v22, %v102_v18  ;;  %v110_v31 = vrot.slane %v109_v23, 4  ;;  %v117_v32 = vrot.slane %v116_v24, 4  ;;  %v124_v33 = vrot.slane %v123_v25, 4  ;;  %p438_p6 = scmp.ne.s32.totalorder %s306_s3, %s437_s9  ;;  %p443_p8 = scmp.lt.s32.totalorder %s437_s9, %s437_s9 }
  0x3c   :  { %v131_v34 = vrot.slane %v130_v26, 4  ;;  %v84_v35 = vrot.slane %v83_v27, 2  ;;  %v91_v36 = vrot.slane %v90_v28, 2  ;;  %v98_v37 = vrot.slane %v97_v29, 2 }
  0x3d   :  { %341 = vmatmul.mubr.msk.bf16.vlgmr.msra.gmra.mxu1 %vm198_vm1, %v138_v8  ;;  %v105_v38 = vrot.slane %v104_v30, 2  ;;  %v111_v39 = vadd.f32 %v110_v31, %v109_v23  ;;  %v118_v40 = vadd.f32 %v117_v32, %v116_v24  ;;  %v125_v41 = vadd.f32 %v124_v33, %v123_v25  ;;  %p444_p9 = por %p443_p8, %p442_p7 }
  0x3e   :  { %v132_v42 = vadd.f32 %v131_v34, %v130_v26  ;;  %vm171_vm3 = vcmask 1041409   ;;  %v85_v43 = vadd.f32 %v84_v35, %v83_v27  ;;  %v92_v44 = vadd.f32 %v91_v36, %v90_v28 }
  0x3f   :  { %v99_v45 = vadd.f32 %v98_v37, %v97_v29  ;;  %v106_v46 = vadd.f32 %v105_v38, %v104_v30  ;;  %v112_v47 = vrot.slane %v111_v39, 2  ;;  %v119_v48 = vrot.slane %v118_v40, 2  ;;  %p445_p10 = pnand %p444_p9, %p438_p6 }
  0x40   :  { %v126_v49 = vrot.slane %v125_v41, 2  ;;  %v133_v50 = vrot.slane %v132_v42, 2  ;;  %vm173_vm4 = vcmask 1042434   ;;  %v86_v51 = vrot.slane %v85_v43, 1 }
  0x41   :  { %v93_v52 = vrot.slane %v92_v44, 1  ;;  %v100_v53 = vrot.slane %v99_v45, 1  ;;  %v107_v54 = vrot.slane %v106_v46, 1  ;;  %v113_v55 = vadd.f32 %v112_v47, %v111_v39 }
  0x42   :  { %v120_v56 = vadd.f32 %v119_v48, %v118_v40  ;;  %v127_v57 = vadd.f32 %v126_v49, %v125_v41  ;;  %v134_v58 = vadd.f32 %v133_v50, %v132_v42  ;;  %v87_v59 = vadd.f32 %v86_v51, %v85_v43 }
  0x43   :  { %v94_v60 = vadd.f32 %v93_v52, %v92_v44  ;;  %v101_v61 = vadd.f32 %v100_v53, %v99_v45  ;;  %v108_v62 = vadd.f32 %v107_v54, %v106_v46  ;;  %v114_v63 = vrot.slane %v113_v55, 1 }
  0x44   :  { %v121_v0 = vrot.slane %v120_v56, 1  ;;  %v128_v1 = vrot.slane %v127_v57, 1  ;;  %v135_v2 = vrot.slane %v134_v58, 1  ;;  %v143_v3 = vpack.c.bf16 %v87_v59, %v87_v59 }
  0x45   :  { %v144_v4 = vpack.c.bf16 %v94_v60, %v94_v60  ;;  %v145_v5 = vpack.c.bf16 %v101_v61, %v101_v61  ;;  %v146_v6 = vpack.c.bf16 %v108_v62, %v108_v62  ;;  %v115_v7 = vadd.f32 %v114_v63, %v113_v55 }
  0x46   :  { %v122_v8 = vadd.f32 %v121_v0, %v120_v56  ;;  %v129_v9 = vadd.f32 %v128_v1, %v127_v57  ;;  %v136_v10 = vadd.f32 %v135_v2, %v134_v58  ;;  %v163_v11 = vunpack.c.l.b16 %v143_v3 }
  0x47   :  { %v164_v12 = vunpack.c.l.b16 %v144_v4  ;;  %v165_v13 = vunpack.c.l.b16 %v145_v5  ;;  %v166_v14 = vunpack.c.l.b16 %v146_v6  ;;  %v147_v15 = vpack.c.bf16 %v115_v7, %v115_v7 }
  0x48   :  { %v148_v16 = vpack.c.bf16 %v122_v8, %v122_v8  ;;  %v149_v17 = vpack.c.bf16 %v129_v9, %v129_v9  ;;  %v150_v18 = vpack.c.bf16 %v136_v10, %v136_v10  ;;  %vm175_vm5 = vcmask 1043459  }
  0x49   :  { %v172_v19 = vsel %vm171_vm3, %v164_v12, %v163_v11  ;;  %v167_v20 = vunpack.c.l.b16 %v147_v15  ;;  %vm177_vm6 = vcmask 1044484   ;;  %vm179_vm7 = vcmask 1045509  }
  0x4a   :  { %v168_v21 = vunpack.c.l.b16 %v148_v16  ;;  %v169_v22 = vunpack.c.l.b16 %v149_v17  ;;  %v174_v23 = vsel %vm173_vm4, %v165_v13, %v172_v19  ;;  %v170_v24 = vunpack.c.l.b16 %v150_v18 }
  0x4b   :  { %v176_v25 = vsel %vm175_vm5, %v166_v14, %v174_v23  ;;  %vm181_vm8 = vcmask 1046534   ;;  %vm183_vm9 = vcmask 1047559  }
  0x4c   :  { %v178_v26 = vsel %vm177_vm6, %v167_v20, %v176_v25 }
  0x4d   :  { %v180_v27 = vsel %vm179_vm7, %v168_v21, %v178_v26 }
  0x4e   :  { %v182_v28 = vsel %vm181_vm8, %v169_v22, %v180_v27 }
  0x4f   :  { %v184_v29 = vsel %vm183_vm9, %v170_v24, %v182_v28 }
  0x50   :  { %v185_v30 = vpack.c.b16 %v184_v29, %v184_v29 }
  0x52   :  { %333 = vmatmul.mubr.msk.bf16.vlgmr.msra.gmra.mxu0 %vm198_vm1, %v185_v30 }
  0xfd   :  { %v291_v31 = vpop.f32.mrf.mxu1 }
  0xff   :  { %v342_v32 = vpop.f32.mrf.mxu1 }
 0x101   :  { %v294_v33 = vpop.f32.mrf.mxu1 }
 0x103   :  { %v343_v34 = vpop.f32.mrf.mxu1 }
 0x112   :  { %v236_v35 = vpop.f32.mrf.mxu0 }
 0x113   :  { %v292_v36 = vadd.f32 %v291_v31, %v236_v35 }
 0x114   :  { %v334_v37 = vpop.f32.mrf.mxu0 }
 0x115   :  { %v297_v38 = vmax.f32 %v292_v36, 0.0 }
 0x116   :  { %v239_v39 = vpop.f32.mrf.mxu0 }
 0x117   :  { %298 = vst.msk [vmem:[#allocation10] sm:$0xff] %vm198_vm1, %v297_v38 }
 0x118   :  { %v335_v40 = vpop.f32.mrf.mxu0 }
 0x119   :  { %448 = shalt.err (!%p445_p10)
}
 0x11a   :  { %308 = dma.vmem_to_hbm [thread:$0]  %s306_s3, 128, %s540_s4, [#allocation4]  }
 0x11b   :  { %463 = dma.done.wait [#allocation4], 128  }
 0x11c   :  { %464 = vsyncadd [#allocation4], 4294967168 }
 0x11d   :  { %312 = vsyncpa [#allocation3], 1 }
 0x11e   :  { %313 = vsyncpa [#allocation6], 1 }
 0x11f   :  { %314 = vsyncpa [#allocation9], 1 }
 0x120   :  { %315 = vsyncpa [#allocation4], 1 }

</bundles_post_ra>
